<compile_context>
chip_gen: v7x
topology: tpu7x:2x2x1
jax: 0.10.0
libtpu: 0.0.40
codegen_flags: <defaults>
</compile_context>

<pallas_src>
import functools

import jax
import jax.numpy as jnp
from jax.experimental import pallas as pl
from jax.experimental.pallas import tpu as pltpu


def _pick_seq_tile(n, requested=None):
    """Largest tile in {256,...,8} dividing n (on v5e prefer requesting 128)."""
    if requested is not None:
        if n % requested:
            raise ValueError(f"tile {requested} must divide sequence length {n}")
        return requested
    for t in (256, 128, 64, 32, 16, 8):
        if n % t == 0:
            return t
    if n < 8:
        return n  # full-extent block is allowed
    raise ValueError(
        f"sequence length {n} has no divisor in {{8..256}}; pad it to a multiple of 8")


# ---------------------------------------------------------------------------
# Stage 1: fused QKV projection -> three lane-dense (B, N, C) outputs.
# ---------------------------------------------------------------------------
def _qkv_proj_kernel(x_ref, w_ref, b_ref, q_ref, k_ref, v_ref, *, c, precision):
    # x_ref: (1, T, C)   w_ref: (C, 3C)   b_ref: (1, 3C)   q/k/v_ref: (1, T, C)
    x = x_ref[0].astype(w_ref.dtype)
    y = jnp.dot(x, w_ref[...], preferred_element_type=jnp.float32,
                precision=precision)
    y = y + b_ref[...]                       # f32 bias add on the f32 accumulator
    q_ref[0] = y[:, :c].astype(q_ref.dtype)
    k_ref[0] = y[:, c:2 * c].astype(k_ref.dtype)
    v_ref[0] = y[:, 2 * c:3 * c].astype(v_ref.dtype)


def _qkv_projection(x, w_qkv, b_qkv, *, c, out_dtype, tile, precision):
    B, N, c_in = x.shape
    nt = N // tile
    kernel = functools.partial(_qkv_proj_kernel, c=c, precision=precision)
    out_block = pl.BlockSpec((1, tile, c), lambda bi, ti: (bi, ti, 0))
    # TODO(synk): for very large C on v7x, tile the 3C output axis (and single-
    # buffer the grid-constant weight) so the (C, 3C) weight stays within 64 MiB.
    return pl.pallas_call(
        kernel,
        out_shape=tuple(jax.ShapeDtypeStruct((B, N, c), out_dtype) for _ in range(3)),
        grid=(B, nt),
        in_specs=[
            pl.BlockSpec((1, tile, c_in), lambda bi, ti: (bi, ti, 0)),
            pl.BlockSpec((c_in, 3 * c), lambda bi, ti: (0, 0)),
            pl.BlockSpec((1, 3 * c), lambda bi, ti: (0, 0)),
        ],
        out_specs=[out_block, out_block, out_block],
        compiler_params=pltpu.CompilerParams(
            dimension_semantics=("parallel", "parallel"),
            vmem_limit_bytes=64 * 1024 * 1024),
    )(x, w_qkv, b_qkv)


# ---------------------------------------------------------------------------
# Stage 2: flash-style attention fused with the output projection.
# ---------------------------------------------------------------------------
def _flash_attn_kernel(q_ref, k_ref, v_ref, wo_ref, bo_ref, o_ref,
                       m_sc, l_sc, acc_sc, *,
                       heads, head_dim, approx_recip, exp_dtype, precision):
    # q_ref: (1, TQ, C)  k/v_ref: (1, TKV, C)  wo_ref: (C, C)  bo_ref: (1, C)
    # o_ref: (1, TQ, C)  scratch: m/l (H, TQ, 1) f32, acc (H, TQ, Dh) f32
    kv_i = pl.program_id(2)

    @pl.when(kv_i == 0)
    def _init():
        m_sc[...] = jnp.full_like(m_sc, -jnp.inf)
        l_sc[...] = jnp.zeros_like(l_sc)
        acc_sc[...] = jnp.zeros_like(acc_sc)

    q = q_ref[0]   # (TQ, C); 1/sqrt(Dh) already folded into wq/bq in f32.
    k = k_ref[0]   # (TKV, C)
    v = v_ref[0]   # (TKV, C)

    # Static per-head lane slices (avoids an in-kernel (T,C)->(T,H,Dh) reshape);
    # each head is one MXU matmul — same FLOPs as a head-batched einsum.
    for h in range(heads):
        sl = slice(h * head_dim, (h + 1) * head_dim)
        q_h, k_h, v_h = q[:, sl], k[:, sl], v[:, sl]
        s = jnp.einsum("qd,kd->qk", q_h, k_h,
                       preferred_element_type=jnp.float32, precision=precision)
        m_prev, l_prev = m_sc[h], l_sc[h]                       # (TQ, 1) f32
        m_new = jnp.maximum(m_prev, jnp.max(s, axis=-1, keepdims=True))
        alpha = jnp.exp(m_prev - m_new)                         # f32 rescale
        # exp in bf16 on the bf16 path (p is cast to the PV matmul dtype anyway).
        p = jnp.exp((s - m_new).astype(exp_dtype))
        l_sc[h] = alpha * l_prev + jnp.sum(p.astype(jnp.float32),
                                           axis=-1, keepdims=True)
        pv = jnp.dot(p.astype(v_h.dtype), v_h,
                     preferred_element_type=jnp.float32, precision=precision)
        acc_sc[h] = alpha * acc_sc[h] + pv
        m_sc[h] = m_new

    # Finalize on the last KV tile: normalize AFTER PV and fuse the output
    # projection so the kernel stores a lane-dense (TQ, C) block.
    @pl.when(kv_i == pl.num_programs(2) - 1)
    def _finalize():
        tq_, c_out = o_ref.shape[1], o_ref.shape[2]
        out = jnp.zeros((tq_, c_out), jnp.float32)
        for h in range(heads):
            ctx_h = acc_sc[h] * pl.reciprocal(l_sc[h], approx=approx_recip)
            wo_h = wo_ref[h * head_dim:(h + 1) * head_dim, :]   # (Dh, C)
            out = out + jnp.dot(ctx_h.astype(wo_ref.dtype), wo_h,
                                preferred_element_type=jnp.float32,
                                precision=precision)
        o_ref[0] = (out + bo_ref[...]).astype(o_ref.dtype)


def _flash_attention_out(q, k, v, w_o, b_o, *, heads, head_dim, tq, tkv,
                         approx_recip, exp_dtype, precision, out_dtype):
    B, N, C = q.shape
    nq, nkv = N // tq, N // tkv
    kernel = functools.partial(_flash_attn_kernel, heads=heads, head_dim=head_dim,
                               approx_recip=approx_recip, exp_dtype=exp_dtype,
                               precision=precision)
    return pl.pallas_call(
        kernel,
        out_shape=jax.ShapeDtypeStruct((B, N, C), out_dtype),
        grid=(B, nq, nkv),
        in_specs=[
            pl.BlockSpec((1, tq, C), lambda bi, qi, ki: (bi, qi, 0)),
            pl.BlockSpec((1, tkv, C), lambda bi, qi, ki: (bi, ki, 0)),
            pl.BlockSpec((1, tkv, C), lambda bi, qi, ki: (bi, ki, 0)),
            # TODO(synk): on v7x single-buffer these two grid-constant operands
            # (pipeline_mode=pl.Buffered(1)) to halve their VMEM footprint.
            pl.BlockSpec((C, C), lambda bi, qi, ki: (0, 0)),
            pl.BlockSpec((1, C), lambda bi, qi, ki: (0, 0)),
        ],
        out_specs=pl.BlockSpec((1, tq, C), lambda bi, qi, ki: (bi, qi, 0)),
        scratch_shapes=[
            pltpu.VMEM((heads, tq, 1), jnp.float32),          # running max m
            pltpu.VMEM((heads, tq, 1), jnp.float32),          # running denom l
            pltpu.VMEM((heads, tq, head_dim), jnp.float32),   # unnormalized acc
        ],
        compiler_params=pltpu.CompilerParams(
            dimension_semantics=("parallel", "parallel", "arbitrary"),
            vmem_limit_bytes=64 * 1024 * 1024),
    )(q, k, v, w_o, b_o)


# ---------------------------------------------------------------------------
# Full forward pass.
# ---------------------------------------------------------------------------
def self_attention(x, params, heads, *, compute_dtype=jnp.bfloat16,
                   approx_recip=True, exp_in_compute_dtype=True,
                   precision=None, tq=None, tkv=None, tn=None):
    """Forward pass of SelfAttention.  x: (B, N, C) -> (B, N, C)."""
    B, N, C = x.shape
    assert C % heads == 0
    head_dim = C // heads
    inv_scale = 1.0 / (float(head_dim) ** 0.5)

    # Fold 1/sqrt(Dh) into the query projection in f32 (before any bf16 cast),
    # and fuse the three projections into one (C, 3C) weight / (1, 3C) bias.
    wq = params["wq"] * inv_scale
    bq = params["bq"] * inv_scale
    w_qkv = jnp.concatenate([wq, params["wk"], params["wv"]],
                            axis=1).astype(compute_dtype)
    b_qkv = jnp.concatenate([bq, params["bk"], params["bv"]],
                            axis=1).astype(jnp.float32)
    w_o = params["wo"].astype(compute_dtype)
    b_o = params["bo"].astype(jnp.float32)

    seq_tile = _pick_seq_tile(N, tn)
    q_tile = _pick_seq_tile(N, tq)
    kv_tile = _pick_seq_tile(N, tkv)

    # Stage 1: fused QKV projection -> head-interleaved lane-dense q/k/v.
    q, k, v = _qkv_projection(x, w_qkv, b_qkv, c=C, out_dtype=compute_dtype,
                              tile=seq_tile, precision=precision)

    is_bf16 = jnp.dtype(compute_dtype) == jnp.dtype(jnp.bfloat16)
    exp_dtype = jnp.bfloat16 if (exp_in_compute_dtype and is_bf16) else jnp.float32

    # Stage 2: flash attention + fused output projection.
    return _flash_attention_out(q, k, v, w_o, b_o, heads=heads,
                                head_dim=head_dim, tq=q_tile, tkv=kv_tile,
                                approx_recip=approx_recip, exp_dtype=exp_dtype,
                                precision=precision, out_dtype=x.dtype)


# ---------------------------------------------------------------------------
# Parameters and pure-JAX reference.
# ---------------------------------------------------------------------------
def init_params(key, in_dim, heads):
    """Deterministic init mirroring LinearGeneral: randn weights, zero bias."""
    head_dim = in_dim // heads
    k1, k2, k3, k4 = jax.random.split(key, 4)
    wq = jax.random.normal(k1, (in_dim, heads, head_dim), jnp.float32)
    wk = jax.random.normal(k2, (in_dim, heads, head_dim), jnp.float32)
    wv = jax.random.normal(k3, (in_dim, heads, head_dim), jnp.float32)
    wo = jax.random.normal(k4, (heads, head_dim, in_dim), jnp.float32)
    return {
        "wq": wq.reshape(in_dim, heads * head_dim),
        "bq": jnp.zeros((1, heads * head_dim), jnp.float32),
        "wk": wk.reshape(in_dim, heads * head_dim),
        "bk": jnp.zeros((1, heads * head_dim), jnp.float32),
        "wv": wv.reshape(in_dim, heads * head_dim),
        "bv": jnp.zeros((1, heads * head_dim), jnp.float32),
        "wo": wo.reshape(heads * head_dim, in_dim),
        "bo": jnp.zeros((1, in_dim), jnp.float32),
    }


def reference_self_attention(x, params, heads, precision=None):
    """Pure-JAX reference matching the PyTorch forward exactly."""
    B, N, C = x.shape
    head_dim = C // heads
    scale = float(head_dim) ** 0.5
    q = (jnp.matmul(x, params["wq"], precision=precision) + params["bq"]
         ).reshape(B, N, heads, head_dim).transpose(0, 2, 1, 3)
    k = (jnp.matmul(x, params["wk"], precision=precision) + params["bk"]
         ).reshape(B, N, heads, head_dim).transpose(0, 2, 1, 3)
    v = (jnp.matmul(x, params["wv"], precision=precision) + params["bv"]
         ).reshape(B, N, heads, head_dim).transpose(0, 2, 1, 3)
    attn = jax.nn.softmax(
        jnp.einsum("bhqd,bhkd->bhqk", q, k, precision=precision) / scale, axis=-1)
    out = jnp.einsum("bhqk,bhkd->bhqd", attn, v,
                     precision=precision).transpose(0, 2, 1, 3)
    out = out.reshape(B, N, heads * head_dim)
    return jnp.matmul(out, params["wo"], precision=precision) + params["bo"]


if __name__ == "__main__":
    B, N, C, HEADS = 2, 8, 32, 4   # in_dim=32, heads=4 -> head_dim=8

    key = jax.random.PRNGKey(0)
    kx, kp = jax.random.split(key)
    x = jax.random.normal(kx, (B, N, C), jnp.float32)
    params = init_params(kp, C, HEADS)

    HI = jax.lax.Precision.HIGHEST
    ref = jax.block_until_ready(
        reference_self_attention(x, params, HEADS, precision=HI))

    # 1) Parity path: f32 matmul operands, f32 exp, exact reciprocal.
    out_f32 = self_attention(x, params, HEADS, compute_dtype=jnp.float32,
                             approx_recip=False, exp_in_compute_dtype=False,
                             precision=HI)
    out_f32 = jax.block_until_ready(out_f32)
    assert out_f32.shape == (B, N, C)
    assert jnp.allclose(out_f32, ref, atol=1e-2, rtol=1e-2), "f32 path mismatch"

    # 2) Performance path: bf16 MXU operands (f32 acc), bf16 exp, approx recip.
    out_bf16 = jax.block_until_ready(self_attention(x, params, HEADS))
    assert out_bf16.shape == (B, N, C)
    assert bool(jnp.isfinite(out_bf16).all())
    rel_err = float(jnp.max(jnp.abs(out_bf16 - ref)) /
                    (jnp.max(jnp.abs(ref)) + 1e-6))
    assert rel_err < 0.15, f"bf16 path rel err too high: {rel_err}"

    print("KERNEL_OK")
</pallas_src>

<mosaic_0001>
module attributes {stable_mosaic.version = 11 : i64} {
  func.func @_qkv_proj_kernel(%arg0: i32, %arg1: i32, %arg2: memref<1x8x32xf32, #tpu.memory_space<vmem>>, %arg3: memref<32x96xf32, #tpu.memory_space<vmem>>, %arg4: memref<1x96xf32, #tpu.memory_space<vmem>>, %arg5: memref<1x8x32xf32, #tpu.memory_space<vmem>>, %arg6: memref<1x8x32xf32, #tpu.memory_space<vmem>>, %arg7: memref<1x8x32xf32, #tpu.memory_space<vmem>>) attributes {dimension_semantics = [#tpu.dimension_semantics<parallel>, #tpu.dimension_semantics<parallel>], iteration_bounds = array<i64: 2, 1>, scalar_prefetch = 0 : i64, scratch_operands = 0 : i64, tpu.core_type = #tpu.core_type<tc>, window_params = [{transform_indices = @transform_0, window_bounds = array<i64: 1, 8, 32>}, {pipeline_mode = #tpu.pipeline_mode<synchronous>, transform_indices = @transform_1, window_bounds = array<i64: 32, 96>}, {pipeline_mode = #tpu.pipeline_mode<synchronous>, transform_indices = @transform_2, window_bounds = array<i64: 1, 96>}, {transform_indices = @transform_3, window_bounds = array<i64: 1, 8, 32>}, {transform_indices = @transform_4, window_bounds = array<i64: 1, 8, 32>}, {transform_indices = @transform_5, window_bounds = array<i64: 1, 8, 32>}]} {
    %c0 = arith.constant 0 : index
    %c0_0 = arith.constant 0 : index
    %c0_1 = arith.constant 0 : index
    %0 = vector.load %arg2[%c0, %c0_0, %c0_1] : memref<1x8x32xf32, #tpu.memory_space<vmem>>, vector<1x8x32xf32>
    %1 = vector.shape_cast %0 : vector<1x8x32xf32> to vector<8x32xf32>
    %c0_2 = arith.constant 0 : index
    %c0_3 = arith.constant 0 : index
    %2 = vector.load %arg3[%c0_2, %c0_3] : memref<32x96xf32, #tpu.memory_space<vmem>>, vector<32x96xf32>
    %cst = arith.constant dense<0.000000e+00> : vector<8x96xf32>
    %3 = tpu.matmul %1, %2, %cst {dimension_numbers = #tpu.dot_dimension_numbers<[1], [0], [0], [1], [0, 0, 1, 1], [], []>, precision = #tpu.contract_precision<fp32>} : vector<8x32xf32>, vector<32x96xf32>, vector<8x96xf32> -> vector<8x96xf32>
    %c0_4 = arith.constant 0 : index
    %c0_5 = arith.constant 0 : index
    %4 = vector.load %arg4[%c0_4, %c0_5] : memref<1x96xf32, #tpu.memory_space<vmem>>, vector<1x96xf32>
    %5 = vector.broadcast %4 : vector<1x96xf32> to vector<8x96xf32>
    %6 = arith.addf %3, %5 : vector<8x96xf32>
    %7 = vector.extract_strided_slice %6 {offsets = [0, 0], sizes = [8, 32], strides = [1, 1]} : vector<8x96xf32> to vector<8x32xf32>
    %c0_6 = arith.constant 0 : index
    %c0_7 = arith.constant 0 : index
    %c0_8 = arith.constant 0 : index
    %8 = vector.load %arg5[%c0_6, %c0_7, %c0_8] : memref<1x8x32xf32, #tpu.memory_space<vmem>>, vector<1x8x32xf32>
    %9 = vector.shape_cast %8 : vector<1x8x32xf32> to vector<8x32xf32>
    %10 = vector.shape_cast %7 : vector<8x32xf32> to vector<1x8x32xf32>
    tpu.vector_store %arg5[%c0_6, %c0_7, %c0_8], %10 {strides = array<i32>} : memref<1x8x32xf32, #tpu.memory_space<vmem>>, vector<1x8x32xf32>,
    %11 = vector.extract_strided_slice %6 {offsets = [0, 32], sizes = [8, 32], strides = [1, 1]} : vector<8x96xf32> to vector<8x32xf32>
    %c0_9 = arith.constant 0 : index
    %c0_10 = arith.constant 0 : index
    %c0_11 = arith.constant 0 : index
    %12 = vector.load %arg6[%c0_9, %c0_10, %c0_11] : memref<1x8x32xf32, #tpu.memory_space<vmem>>, vector<1x8x32xf32>
    %13 = vector.shape_cast %12 : vector<1x8x32xf32> to vector<8x32xf32>
    %14 = vector.shape_cast %11 : vector<8x32xf32> to vector<1x8x32xf32>
    tpu.vector_store %arg6[%c0_9, %c0_10, %c0_11], %14 {strides = array<i32>} : memref<1x8x32xf32, #tpu.memory_space<vmem>>, vector<1x8x32xf32>,
    %15 = vector.extract_strided_slice %6 {offsets = [0, 64], sizes = [8, 32], strides = [1, 1]} : vector<8x96xf32> to vector<8x32xf32>
    %c0_12 = arith.constant 0 : index
    %c0_13 = arith.constant 0 : index
    %c0_14 = arith.constant 0 : index
    %16 = vector.load %arg7[%c0_12, %c0_13, %c0_14] : memref<1x8x32xf32, #tpu.memory_space<vmem>>, vector<1x8x32xf32>
    %17 = vector.shape_cast %16 : vector<1x8x32xf32> to vector<8x32xf32>
    %18 = vector.shape_cast %15 : vector<8x32xf32> to vector<1x8x32xf32>
    tpu.vector_store %arg7[%c0_12, %c0_13, %c0_14], %18 {strides = array<i32>} : memref<1x8x32xf32, #tpu.memory_space<vmem>>, vector<1x8x32xf32>,
    return
  }
  func.func @transform_0(%arg0: i32, %arg1: i32) -> (i32, i32, i32) {
    %c0_i32 = arith.constant 0 : i32
    %c0_i32_0 = arith.constant 0 : i32
    return %arg0, %arg1, %c0_i32 : i32, i32, i32
  }
  func.func @transform_1(%arg0: i32, %arg1: i32) -> (i32, i32) {
    %c0_i32 = arith.constant 0 : i32
    %c0_i32_0 = arith.constant 0 : i32
    %c0_i32_1 = arith.constant 0 : i32
    return %c0_i32, %c0_i32_0 : i32, i32
  }
  func.func @transform_2(%arg0: i32, %arg1: i32) -> (i32, i32) {
    %c0_i32 = arith.constant 0 : i32
    %c0_i32_0 = arith.constant 0 : i32
    %c0_i32_1 = arith.constant 0 : i32
    return %c0_i32, %c0_i32_0 : i32, i32
  }
  func.func @transform_3(%arg0: i32, %arg1: i32) -> (i32, i32, i32) {
    %c0_i32 = arith.constant 0 : i32
    %c0_i32_0 = arith.constant 0 : i32
    return %arg0, %arg1, %c0_i32 : i32, i32, i32
  }
  func.func @transform_4(%arg0: i32, %arg1: i32) -> (i32, i32, i32) {
    %c0_i32 = arith.constant 0 : i32
    %c0_i32_0 = arith.constant 0 : i32
    return %arg0, %arg1, %c0_i32 : i32, i32, i32
  }
  func.func @transform_5(%arg0: i32, %arg1: i32) -> (i32, i32, i32) {
    %c0_i32 = arith.constant 0 : i32
    %c0_i32_0 = arith.constant 0 : i32
    return %arg0, %arg1, %c0_i32 : i32, i32, i32
  }
}

</mosaic_0001>

<bundles_post_ra>
// kernel: tpu_custom_call.1
= control target key start
LH: loop header
LB: loop body
LE: loop exit
PB: predicated region body
PF: predicated region fallthrough
CT: control target
= control target key end

     0   :  { %11 = vsyncpa [#allocation3], 0  ;;  %s1933_s0 = inlined_call_operand.hbm [shape: f32[2,8,32], index: 0, kind: input, shape index: {}]   ;;  %s1934_s1 = inlined_call_operand.hbm [shape: f32[32,96], index: 1, kind: input, shape index: {}]   ;;  %s1935_s2 = inlined_call_operand.hbm [shape: f32[1,96], index: 2, kind: input, shape index: {}]   ;;  %s1936_s3 = inlined_call_operand.hbm [shape: f32[2,8,32], index: 3, kind: output, shape index: {0}]   ;;  %s1937_s4 = inlined_call_operand.hbm [shape: f32[2,8,32], index: 4, kind: output, shape index: {1}]   ;;  %s1938_s5 = inlined_call_operand.hbm [shape: f32[2,8,32], index: 5, kind: output, shape index: {2}]  }
   0x1   :  { %13 = vsyncpa [#allocation3 + $0x1], 0 }
   0x2   :  { %14 = vsyncpa [#allocation6], 0 }
   0x3   :  { %15 = vsyncpa [#allocation4], 0 }
   0x4   :  { %17 = vsyncpa [#allocation4 + $0x1], 0 }
   0x5   :  { %18 = vsyncpa [#allocation10], 0 }
   0x6   :  { %20 = vsyncpa [#allocation10 + $0x1], 0  ;;  %s1575_s18 = smov 0   ;;  %s1577_s19 = smov 0  }
   0x7   :  { %s1579_s20 = smov 0   ;;  %s1581_s21 = smov 0  }
   0x8   :  { %s1583_s22 = smov 0   ;;  %s1585_s23 = smov 0  }
   0x9 LB: > { %s1606_s24 = sadd.s32 4294967295, %s1530_s23   ;;  %s1033_s25 = sadd.s32 4294967294, %s1530_s23   ;;  %s1530_s23 = sphi %s1585_s23, %s26_s23   ;;  %s1526_s22 = sphi %s1583_s22, %s1959_s22   ;;  %s1522_s21 = sphi %s1581_s21, %s1958_s21   ;;  %s1518_s20 = sphi %s1579_s20, %s1957_s20   ;;  %s1514_s19 = sphi %s1577_s19, %s1956_s19   ;;  %s1510_s18 = sphi %s1575_s18, %s1955_s18  }
   0xa   : > { %p60_p0 = scmp.ne.s32.totalorder %s1514_s19, %s1510_s18  ;;  %p1939_p1 = scmp.eq.s32.totalorder %s1606_s24, 0 }
   0xb   : > { %p134_p3 = scmp.eq.s32.totalorder %s1033_s25, 1  ;;  %p1034_p5 = scmp.ge.s32.totalorder %s1530_s23, 1 }
   0xc   : > { %p1617_p4 = por %p1939_p1, %p60_p0  ;;  %p197_p7 = scmp.lt.s32.totalorder %s1530_s23, 3 }
   0xd   : > { %p1622_p6 = por %p134_p3, %p60_p0  ;;  %s1532_s29 = smov [#allocation5]  }
   0xe   : > { %s1942_s26 = scalar_select %p1617_p4, 1, 0 }
   0xf   : > { %s1943_s27 = scalar_select %p1622_p6, 1, 0 }
  0x10   : > { %p1627_p8 = pnand %p1034_p5, %p197_p7  ;;  %s209_s30 = sshll.u32 %s1532_s29, 4  ;;  %s1631_s30 = int_to_ptr.vmem [resolvable:$true] %s209_s30 }
  0x11   : > { %s1533_s7 = smov [#allocation7]   ;;  %s1298_s11 = scalar_lea.hbm %s1934_s1, 512 }
  0x12   : > { %p1214_p9 = pneg %p1627_p8  ;;  %s223_s8 = sshll.u32 %s1533_s7, 4  ;;  %s1642_s8 = int_to_ptr.vmem [resolvable:$true] %s223_s8 }
  0x13   : > { %p1299_p12 = scmp.ne.s32.totalorder %s1934_s1, %s1298_s11  ;;  %p1305_p5 = scmp.lt.u32.totalorder %s1298_s11, %s1934_s1 }
  0x14   : > { %p1638_p11 = pnand %p1214_p9, %p1939_p1 }
  0x16   : > { %p1300_p13 = pneg %p1638_p11 }
  0x18   : > { %p1301_p0 = pnand %p1300_p13, %p1299_p12 }
  0x1a   : > { %p1302_p3 = pneg %p1301_p0 }
  0x1c   : > { %p1307_p7 = pnand %p1305_p5, %p1302_p3 }
  0x1e   : > { %1310 = shalt.err (!%p1307_p7)
}
  0x1f   : > { %s1311_s16 = scalar_lea.vmem %s1631_s30, 512  ;;  %p1319_p2 = scmp.lt.s32.totalorder %s1631_s30, %s1631_s30 }
  0x20   : > { %p1312_p9 = scmp.ne.s32.totalorder %s1631_s30, %s1311_s16  ;;  %p1320_p12 = scmp.lt.s32.totalorder %s1311_s16, %s1311_s16 }
  0x22   : > { %p1314_p10 = pnand %p1312_p9, %p1300_p13  ;;  %p1321_p0 = por %p1320_p12, %p1319_p2 }
  0x24   : > { %p1315_p1 = pneg %p1314_p10 }
  0x26   : > { %p1322_p6 = pnand %p1321_p0, %p1315_p1 }
  0x28   : > { %1325 = shalt.err (!%p1322_p6)
}
  0x29   : > { %s1534_s17 = smov 128   ;;  %s1535_s29 = smov 8  }
  0x2a   : > { %1217 = dma.hbm_to_vmem [thread:$0]  (!%p1638_p11), %s1934_s1, 512, %s1631_s30, [#allocation6], %s1534_s17, %s1534_s17, %s1535_s29  }
  0x2b   : > { %s1326_s12 = scalar_lea.hbm %s1935_s2, 16 }
  0x2c   : > { %p1327_p2 = scmp.ne.s32.totalorder %s1935_s2, %s1326_s12  ;;  %p1333_p10 = scmp.lt.u32.totalorder %s1326_s12, %s1935_s2 }
  0x2e   : > { %p1329_p1 = pnand %p1327_p2, %p1300_p13 }
  0x30   : > { %p1330_p6 = pneg %p1329_p1 }
  0x32   : > { %p1335_p3 = pnand %p1333_p10, %p1330_p6 }
  0x34   : > { %1338 = shalt.err (!%p1335_p3)
}
  0x35   : > { %s1339_s30 = scalar_lea.vmem %s1642_s8, 16  ;;  %s1346_s17 = scalar_lea.vmem %s1642_s8, 32 }
  0x36   : > { %p1340_p5 = scmp.ne.s32.totalorder %s1642_s8, %s1339_s30  ;;  %p1347_p12 = scmp.lt.s32.totalorder %s1642_s8, %s1642_s8 }
  0x37   : > { %p1348_p0 = scmp.lt.s32.totalorder %s1346_s17, %s1339_s30 }
  0x38   : > { %p1342_p7 = pnand %p1340_p5, %p1300_p13 }
  0x39   : > { %p1349_p2 = por %p1348_p0, %p1347_p12 }
  0x3a   : > { %p1343_p9 = pneg %p1342_p7 }
  0x3c   : > { %p1350_p1 = pnand %p1349_p2, %p1343_p9 }
  0x3e   : > { %1353 = shalt.err (!%p1350_p1)
}
  0x3f   : > { %1220 = dma.hbm_to_vmem [thread:$0]  (!%p1638_p11), %s1935_s2, 16, %s1642_s8, [#allocation6]  }
  0x40   : > { %s38_s9 = sadd.s32 1, %s1526_s22  ;;  %s47_s10 = sadd.s32 1, %s1518_s20 }
  0x41   : > { %p40_p13 = scmp.ge.s32.totalorder %s38_s9, 2  ;;  %p54_p6 = scmp.ne.s32.totalorder %s1518_s20, %s1514_s19 }
  0x42   : > { %p55_p10 = scmp.eq.s32.totalorder %s1530_s23, 0  ;;  %p1237_p3 = scmp.lt.s32.totalorder %s1530_s23, 2 }
  0x43   : > { %s1961_s9 = smov (%p40_p13, %s38_s9), 0  ;;  %p1946_p7 = scmp.eq.s32.totalorder %s1606_s24, 1 }
  0x44   : > { %p56_p5 = por %p55_p10, %p54_p6  ;;  %s42_s11 = ssub.s32 %s1526_s22, %s1961_s9 }
  0x45   : > { %p1707_p9 = por %p1946_p7, %p54_p6  ;;  %s234_s12 = sand.u32 1, %s1518_s20  }
  0x46   : > { %p45_p12 = scmp.eq.s32.totalorder %s42_s11, 0  ;;  %s1038_s8 = sshll.u32 %s234_s12, 3 }
  0x47   : > { %s1947_s6 = scalar_select %p1707_p9, 1, 0 }
  0x48   : > { %s1039_s13 = sshll.u32 %s1526_s22, 7  ;;  %s238_s17 = scalar_lea.vmem [#allocation2], %s1038_s8 }
  0x49   : > { %s1716_s14 = scalar_select %p45_p12, %s1518_s20, %s47_s10  }
  0x4a   : > { %s1721_s30 = scalar_lea.hbm %s1933_s0, %s1039_s13  ;;  %s246_s29 = sshll.u32 %s238_s17, 4  ;;  %s1729_s29 = int_to_ptr.vmem [resolvable:$true] %s246_s29 }
  0x4b   : > { %p1725_p11 = pnand %p1237_p3, %p56_p5  ;;  %s235_s10 = scalar_lea.sflag [#allocation3], %s234_s12 }
  0x4c   : > { %s1354_s11 = scalar_lea.hbm %s1721_s30, 128  ;;  %s1359_s15 = scalar_lea.hbm %s1933_s0, 256 }
  0x4d   : > { %p1355_p0 = scmp.ne.s32.totalorder %s1721_s30, %s1354_s11  ;;  %p1356_p2 = pneg %p1725_p11 }
  0x4e   : > { %p1360_p6 = scmp.lt.u32.totalorder %s1721_s30, %s1933_s0  ;;  %p1361_p10 = scmp.lt.u32.totalorder %s1359_s15, %s1354_s11 }
  0x4f   : > { %p1357_p1 = pnand %p1356_p2, %p1355_p0  ;;  %p1363_p5 = scmp.lt.u32.totalorder %s1354_s11, %s1721_s30 }
  0x50   : > { %p1362_p3 = por %p1361_p10, %p1360_p6 }
  0x51   : > { %p1358_p13 = pneg %p1357_p1 }
  0x52   : > { %p1364_p7 = por %p1363_p5, %p1362_p3 }
  0x54   : > { %p1365_p12 = pnand %p1364_p7, %p1358_p13 }
  0x56   : > { %1368 = shalt.err (!%p1365_p12)
}
  0x57   : > { %s1369_s12 = scalar_lea.vmem %s1729_s29, 128  ;;  %s1536_s8 = smov [#allocation2]  }
  0x58   : > { %p1370_p0 = scmp.ne.s32.totalorder %s1729_s29, %s1369_s12  ;;  %s1374_s13 = sshll.u32 %s1536_s8, 4  ;;  %s1375_s13 = int_to_ptr.vmem [resolvable:$false] %s1374_s13 }
  0x59   : > { %s1376_s16 = scalar_lea.vmem %s1375_s13, 256  ;;  %p1377_p4 = scmp.lt.s32.totalorder %s1729_s29, %s1375_s13 }
  0x5a   : > { %p1372_p1 = pnand %p1370_p0, %p1356_p2  ;;  %p1378_p6 = scmp.lt.s32.totalorder %s1376_s16, %s1369_s12 }
  0x5c   : > { %p1373_p9 = pneg %p1372_p1  ;;  %p1379_p10 = por %p1378_p6, %p1377_p4 }
  0x5e   : > { %p1380_p3 = pnand %p1379_p10, %p1373_p9 }
  0x60   : > { %1383 = shalt.err (!%p1380_p3)
}
  0x61   : > { %1224 = dma.hbm_to_vmem [thread:$0]  (!%p1725_p11), %s1721_s30, 128, %s1729_s29, %s235_s10  }
  0x62   : > { %255 = sbr.rel (%p1627_p8) target bundleno = 507 (0x1fb), region = 32  ;;  %s1759_s11 = sand.u32 (!%p1627_p8), 1, %s1514_s19  }
  0x63   : > { %s1762_s15 = sshll.u32 (!%p1627_p8), %s1759_s11, 3  ;;  %s258_s17 = scalar_lea.sflag (!%p1627_p8), [#allocation3], %s1759_s11 }
  0x64   : > { %s261_s12 = scalar_lea.vmem (!%p1627_p8), [#allocation2], %s1762_s15  ;;  %p1949_p4 = scmp.ne.s32.totalorder (!%p1627_p8), %s1942_s26, 0 }
  0x69   : > { %1493 = dma.done.wait (%p1949_p4), %s258_s17, 128  }
  0x6a   : > { %1495 = vsyncadd (%p1949_p4), %s258_s17, 4294967168  ;;  %p1950_p9 = scmp.eq.s32.totalorder %s1606_s24, 0 }
  0x6c   : > { %1497 = dma.done.wait (%p1950_p9), [#allocation6], 528   ;;  %p1951_p8 = pmov %p1950_p9 }
  0x6d   : > { %v1537_v0 = vmov 0.0|0.0   ;;  %vm1538_vm0 = vmmov 0   ;;  %v1539_v1 = vmov 0.0   ;;  %vm318_vm1 = vcmask 261120   ;;  %v307_v2 = vld [vmem:[#allocation5] sm:$0xff]  ;;  %v308_v3 = vld [vmem:[#allocation5 + $0x8] sm:$0xff] }
  0x6e   : > { %1499 = vsyncadd (%p1951_p8), [#allocation6], 4294966768  ;;  %1152 = vmatprep.subr.bf16.mxu1 %v1537_v0  ;;  %1170 = vmatprep.subr.bf16.mxu0 %v1537_v0  ;;  %v309_v4 = vld [vmem:[#allocation5 + $0x10] sm:$0xff]  ;;  %v323_v5 = vand.u32 4294901760, %v307_v2  ;;  %v326_v6 = vand.u32 4294901760, %v308_v3  ;;  %v310_v7 = vld [vmem:[#allocation5 + $0x18] sm:$0xff] }
  0x6f   : > { %1094 = vmatprep.mubr.msk.f32.mxu1 %vm1538_vm0, %v1539_v1  ;;  %1127 = vmatprep.mubr.msk.f32.mxu0 %vm1538_vm0, %v1539_v1  ;;  %v329_v8 = vand.u32 4294901760, %v309_v4  ;;  %v306_v9 = vld [vmem:[%s261_s12] sm:$0xff]  ;;  %v332_v10 = vand.u32 4294901760, %v310_v7  ;;  %v1047_v41 = vld [vmem:[#allocation7] ss:$0 sm:$0xff]  ;;  %s1800_s26 = sshll.u32 %s1522_s21, 7 }
  0x70   : > { %v320_v11 = vsel %vm318_vm1, %v306_v9, 0  ;;  %v1153_v12 = vpack.c.bf16 %v326_v6, %v323_v5  ;;  %v403_v13 = vsub.f32 %v307_v2, %v323_v5  ;;  %v410_v14 = vsub.f32 %v308_v3, %v326_v6  ;;  %s291_s28 = scalar_lea.vmem [#allocation8], %s1762_s15  ;;  %s1807_s10 = scalar_lea.hbm %s1936_s3, %s1800_s26 }
  0x71   : > { %v417_v15 = vsub.f32 %v309_v4, %v329_v8  ;;  %v424_v16 = vsub.f32 %v310_v7, %v332_v10  ;;  %v391_v17 = vand.u32 4294901760, %v320_v11  ;;  %v1156_v18 = vpack.c.bf16 %v332_v10, %v329_v8  ;;  %s842_s30 = sshll.u32 %s291_s28, 4  ;;  %s1540_s8 = smov 96   ;;  %s1809_s30 = int_to_ptr.vmem [resolvable:$true] %s842_s30 }
  0x72   : > { %1154 = vmatpush3.bf16.msra.mxu1 %v1153_v12  ;;  %1172 = vmatpush3.bf16.msra.mxu0 %v1153_v12  ;;  %v404_v19 = vand.u32 4294901760, %v403_v13  ;;  %v411_v20 = vand.u32 4294901760, %v410_v14  ;;  %v1165_v39 = vpack.c.bf16 %v410_v14, %v403_v13  ;;  %s818_s21 = scalar_lea.sflag [#allocation4], %s1759_s11  ;;  %s1384_s13 = scalar_lea.vmem %s1809_s30, 128 }
  0x73   : > { %v418_v21 = vand.u32 4294901760, %v417_v15  ;;  %1155 = vmatprep.subr.bf16.mxu1 %v1537_v0  ;;  %1173 = vmatprep.subr.bf16.mxu0 %v1537_v0  ;;  %v392_v22 = vsub.f32 %v320_v11, %v391_v17  ;;  %v425_v23 = vand.u32 4294901760, %v424_v16  ;;  %v1168_v40 = vpack.c.bf16 %v424_v16, %v417_v15  ;;  %p1385_p11 = scmp.ne.s32.totalorder %s1809_s30, %s1384_s13  ;;  %p1952_p2 = scmp.ne.s32.totalorder %s1947_s6, 0 }
  0x74   : > { %v405_v24 = vsub.f32 %v403_v13, %v404_v19  ;;  %v412_v25 = vsub.f32 %v410_v14, %v411_v20  ;;  %v1177_v31 = vpack.c.bf16 %v411_v20, %v404_v19  ;;  %s1541_s16 = smov [#allocation8]  }
  0x75   : > { %v419_v26 = vsub.f32 %v417_v15, %v418_v21  ;;  %v393_v27 = vand.u32 4294901760, %v392_v22  ;;  %v426_v28 = vsub.f32 %v424_v16, %v425_v23  ;;  %v1180_v37 = vpack.c.bf16 %v425_v23, %v418_v21  ;;  %p1386_p13 = pnand %p1385_p11, %p1952_p2  ;;  %s1388_s17 = sshll.u32 %s1541_s16, 4  ;;  %s1389_s17 = int_to_ptr.vmem [resolvable:$false] %s1388_s17 }
  0x76   : > { %1157 = vmatpush3.bf16.msra.mxu1 %v1156_v18  ;;  %1175 = vmatpush3.bf16.msra.mxu0 %v1156_v18  ;;  %v406_v29 = vand.u32 4294901760, %v405_v24  ;;  %v413_v30 = vand.u32 4294901760, %v412_v25  ;;  %s1390_s12 = scalar_lea.vmem %s1389_s17, 256  ;;  %p1391_p7 = scmp.lt.s32.totalorder %s1809_s30, %s1389_s17 }
  0x77   : > { %v394_v32 = vsub.f32 %v392_v22, %v393_v27  ;;  %1158 = vmatprep.subr.bf16.mxu1 %v1537_v0  ;;  %1176 = vmatprep.subr.bf16.mxu0 %v1537_v0  ;;  %v420_v34 = vand.u32 4294901760, %v419_v26  ;;  %v427_v35 = vand.u32 4294901760, %v426_v28  ;;  %p1387_p5 = pneg %p1386_p13  ;;  %p1392_p12 = scmp.lt.s32.totalorder %s1390_s12, %s1384_s13 }
  0x78   : > { %v1159_v33 = vpack.c.bf16 %v413_v30, %v406_v29 }
  0x79   : > { %v395_v36 = vand.u32 4294901760, %v394_v32  ;;  %1128 = vmatmul.mubr.f32.vlgmr.msra.gmra.mrb[0].mxu0 %v393_v27  ;;  %v1162_v38 = vpack.c.bf16 %v427_v35, %v420_v34  ;;  %p1393_p0 = por %p1392_p12, %p1391_p7 }
  0x7a   : > { %1178 = vmatpush3.bf16.msra.mxu0 %v1177_v31  ;;  %1138 = vmatprep.mubr.msk.f32.mxu0 %vm1538_vm0, %v1539_v1 }
  0x7b   : > { %1095 = vmatmul.mubr.f32.vlgmr.msra.gmra.mrb[0].mxu1 %v395_v36  ;;  %1179 = vmatprep.subr.bf16.mxu0 %v1537_v0  ;;  %p1394_p1 = pnand %p1393_p0, %p1387_p5 }
  0x7c   : > { %1160 = vmatpush3.bf16.msra.mxu1 %v1159_v33  ;;  %1105 = vmatprep.mubr.msk.f32.mxu1 %vm1538_vm0, %v1539_v1 }
  0x7d   : > { %1161 = vmatprep.subr.bf16.mxu1 %v1537_v0 }
  0x7e   : > { %1181 = vmatpush3.bf16.msra.mxu0 %v1180_v37 }
  0x7f   : > { %1182 = vmatprep.subr.bf16.mxu0 %v1537_v0 }
  0x80   : > { %1163 = vmatpush3.bf16.msra.mxu1 %v1162_v38 }
  0x81   : > { %1164 = vmatprep.subr.bf16.mxu1 %v1537_v0  ;;  %1139 = vmatmul.mubr.f32.vlgmr.msra.gmra.mrb[0].mxu0 %v391_v17 }
  0x82   : > { %1184 = vmatpush3.bf16.msra.mxu0 %v1153_v12  ;;  %1149 = vmatprep.mubr.msk.f32.mxu0 %vm1538_vm0, %v1539_v1 }
  0x83   : > { %1106 = vmatmul.mubr.f32.vlgmr.msra.gmra.mrb[0].mxu1 %v391_v17  ;;  %1185 = vmatprep.subr.bf16.mxu0 %v1537_v0 }
  0x84   : > { %1166 = vmatpush3.bf16.msra.mxu1 %v1165_v39  ;;  %1116 = vmatprep.mubr.msk.f32.mxu1 %vm1538_vm0, %v1539_v1 }
  0x85   : > { %1167 = vmatprep.subr.bf16.mxu1 %v1537_v0 }
  0x86   : > { %1187 = vmatpush3.bf16.msra.mxu0 %v1156_v18 }
  0x88   : > { %1169 = vmatpush3.bf16.msra.mxu1 %v1168_v40 }
  0x89   : > { %1150 = vmatmul.mubr.f32.vlgmr.msra.gmra.mrb[0].mxu0 %v391_v17 }
  0x8b   : > { %1117 = vmatmul.mubr.f32.vlgmr.msra.gmra.mrb[0].mxu1 %v392_v22 }
 0x15c   : > { %v803_v42 = vpop.f32.mrb[0].mxu0 }
 0x15d   : > { %v1151_v43 = vpop.f32.mrb[1].mxu0 }
 0x15e   : > { %v568_v44 = vpop.f32.mrb[0].mxu1 }
 0x15f   : > { %v1188_v45 = vadd.f32 %v1047_v41, %v568_v44  ;;  %v1118_v46 = vpop.f32.mrb[1].mxu1 }
 0x161   : > { %v1189_v47 = vadd.f32 %v1188_v45, %v803_v42 }
 0x163   : > { %809 = vrot.lane.b32.xlu0 %v1189_v47, %s1540_s8  ;;  %807 = vst.msk [vmem:[%s291_s28] sm:$0xff] %vm318_vm1, %v1189_v47 }
 0x164   : > { %1397 = shalt.err (!%p1394_p1)
}
 0x165   : > { %s1398_s11 = scalar_lea.hbm %s1807_s10, 128  ;;  %s1402_s7 = scalar_lea.hbm %s1936_s3, 256 }
 0x166   : > { %p1399_p6 = scmp.ne.s32.totalorder %s1807_s10, %s1398_s11  ;;  %p1403_p4 = scmp.lt.u32.totalorder %s1807_s10, %s1936_s3 }
 0x167   : > { %p1404_p9 = scmp.lt.u32.totalorder %s1402_s7, %s1398_s11  ;;  %p1406_p11 = scmp.lt.u32.totalorder %s1398_s11, %s1807_s10 }
 0x168   : > { %p1400_p10 = pnand %p1399_p6, %p1952_p2 }
 0x169   : > { %p1405_p8 = por %p1404_p9, %p1403_p4 }
 0x16a   : > { %p1401_p3 = pneg %p1400_p10 }
 0x16b   : > { %p1407_p13 = por %p1406_p11, %p1405_p8 }
 0x16d   : > { %p1408_p5 = pnand %p1407_p13, %p1401_p3 }
 0x16f   : > { %1411 = shalt.err (!%p1408_p5)
}
 0x170   : > { %1208 = dma.vmem_to_hbm [thread:$0]  (%p1952_p2), %s1809_s30, 128, %s1807_s10, %s818_s21  }
 0x171   : > { %s1542_s13 = smov 64   ;;  %s822_s17 = sand.u32 1, %s1606_s24  }
 0x172   : > { %813 = vrot.lane.b32.xlu0 %v1189_v47, %s1542_s13  ;;  %s298_s12 = scalar_lea.vmem [#allocation9], %s1762_s15  ;;  %s1840_s7 = scalar_lea.hbm %s1937_s4, %s1800_s26 }
 0x173   : > { %s856_s28 = sshll.u32 %s298_s12, 4  ;;  %s305_s8 = scalar_lea.vmem [#allocation11], %s1762_s15  ;;  %s1842_s28 = int_to_ptr.vmem [resolvable:$true] %s856_s28 }
 0x174   : > { %s1847_s16 = sshll.u32 %s305_s8, 4  ;;  %s1850_s24 = scalar_lea.sflag [#allocation10], %s822_s17  ;;  %s1881_s16 = int_to_ptr.vmem [resolvable:$true] %s1847_s16 }
 0x175   : > { %s1412_s30 = scalar_lea.vmem %s1842_s28, 128  ;;  %s1543_s10 = smov [#allocation9]  }
 0x176   : > { %p1413_p7 = scmp.ne.s32.totalorder %s1842_s28, %s1412_s30  ;;  %s1416_s21 = sshll.u32 %s1543_s10, 4  ;;  %s1417_s21 = int_to_ptr.vmem [resolvable:$false] %s1416_s21 }
 0x177   : > { %s1418_s13 = scalar_lea.vmem %s1417_s21, 256  ;;  %p1419_p1 = scmp.lt.s32.totalorder %s1842_s28, %s1417_s21 }
 0x178   : > { %p1414_p12 = pnand %p1413_p7, %p1952_p2  ;;  %p1420_p6 = scmp.lt.s32.totalorder %s1418_s13, %s1412_s30 }
 0x17a   : > { %p1415_p0 = pneg %p1414_p12  ;;  %p1421_p10 = por %p1420_p6, %p1419_p1 }
 0x17c   : > { %p1422_p3 = pnand %p1421_p10, %p1415_p0 }
 0x1d5   : > { %v810_v48 = vpop.permute.xlu0 %809 }
 0x1d6   : > { %812 = vst.msk [vmem:[%s298_s12] sm:$0xff] %vm318_vm1, %v810_v48 }
 0x1d7   : > { %1425 = shalt.err (!%p1422_p3)
}
 0x1d8   : > { %s1426_s17 = scalar_lea.hbm %s1840_s7, 128  ;;  %s1430_s29 = scalar_lea.hbm %s1937_s4, 256 }
 0x1d9   : > { %p1427_p4 = scmp.ne.s32.totalorder %s1840_s7, %s1426_s17  ;;  %p1431_p11 = scmp.lt.u32.totalorder %s1840_s7, %s1937_s4 }
 0x1da   : > { %p1432_p13 = scmp.lt.u32.totalorder %s1430_s29, %s1426_s17  ;;  %p1434_p7 = scmp.lt.u32.totalorder %s1426_s17, %s1840_s7 }
 0x1db   : > { %p1428_p9 = pnand %p1427_p4, %p1952_p2 }
 0x1dc   : > { %p1433_p5 = por %p1432_p13, %p1431_p11 }
 0x1dd   : > { %p1429_p8 = pneg %p1428_p9 }
 0x1de   : > { %p1435_p12 = por %p1434_p7, %p1433_p5 }
 0x1e0   : > { %p1436_p0 = pnand %p1435_p12, %p1429_p8 }
 0x1e2   : > { %1439 = shalt.err (!%p1436_p0)
}
 0x1e3   : > { %1209 = dma.vmem_to_hbm [thread:$0]  (%p1952_p2), %s1842_s28, 128, %s1840_s7, %s1850_s24  }
 0x1e4   : > { %s1878_s12 = scalar_lea.hbm %s1938_s5, %s1800_s26  ;;  %v814_v49 = vpop.permute.xlu0 %813  ;;  %s1440_s17 = scalar_lea.vmem %s1881_s16, 128 }
 0x1e5   : > { %816 = vst.msk [vmem:[%s305_s8] sm:$0xff] %vm318_vm1, %v814_v49  ;;  %p1441_p1 = scmp.ne.s32.totalorder %s1881_s16, %s1440_s17  ;;  %s1544_s28 = smov [#allocation11]  }
 0x1e6   : > { %s1444_s7 = sshll.u32 %s1544_s28, 4  ;;  %s1445_s7 = int_to_ptr.vmem [resolvable:$false] %s1444_s7 }
 0x1e7   : > { %p1442_p6 = pnand %p1441_p1, %p1952_p2  ;;  %s1446_s11 = scalar_lea.vmem %s1445_s7, 256 }
 0x1e8   : > { %p1447_p3 = scmp.lt.s32.totalorder %s1881_s16, %s1445_s7  ;;  %p1448_p4 = scmp.lt.s32.totalorder %s1446_s11, %s1440_s17 }
 0x1e9   : > { %p1443_p10 = pneg %p1442_p6 }
 0x1ea   : > { %p1449_p9 = por %p1448_p4, %p1447_p3 }
 0x1ec   : > { %p1450_p8 = pnand %p1449_p9, %p1443_p10 }
 0x1ee   : > { %1453 = shalt.err (!%p1450_p8)
}
 0x1ef   : > { %s1454_s15 = scalar_lea.hbm %s1878_s12, 128  ;;  %s1458_s29 = scalar_lea.hbm %s1938_s5, 256 }
 0x1f0   : > { %p1455_p11 = scmp.ne.s32.totalorder %s1878_s12, %s1454_s15  ;;  %p1459_p7 = scmp.lt.u32.totalorder %s1878_s12, %s1938_s5 }
 0x1f1   : > { %p1460_p12 = scmp.lt.u32.totalorder %s1458_s29, %s1454_s15  ;;  %p1462_p1 = scmp.lt.u32.totalorder %s1454_s15, %s1878_s12 }
 0x1f2   : > { %p1456_p13 = pnand %p1455_p11, %p1952_p2 }
 0x1f3   : > { %p1461_p0 = por %p1460_p12, %p1459_p7 }
 0x1f4   : > { %p1457_p5 = pneg %p1456_p13 }
 0x1f5   : > { %p1463_p6 = por %p1462_p1, %p1461_p0 }
 0x1f7   : > { %p1464_p10 = pnand %p1463_p6, %p1457_p5 }
 0x1f9   : > { %1467 = shalt.err (!%p1464_p10)
}
 0x1fa   : > { %1210 = dma.vmem_to_hbm [thread:$0]  (%p1952_p2), %s1881_s16, 128, %s1878_s12, %s1850_s24  }
 0x1fb PF: > { %s882_s30 = sand.u32 1, %s1510_s18   ;;  %p1953_p3 = scmp.ne.s32.totalorder %s1943_s27, 0 }
 0x1fc   : > { %p1954_p4 = scmp.ge.s32.totalorder %s1530_s23, 2  ;;  %s883_s13 = scalar_lea.sflag [#allocation4], %s882_s30 }
 0x1fe   : > { %p1226_p9 = pnand %p1954_p4, %p1953_p3 }
 0x200   : > { %1501 = dma.done.wait (!%p1226_p9), %s883_s13, 128  }
 0x201   : > { %1503 = vsyncadd (!%p1226_p9), %s883_s13, 4294967168  ;;  %s891_s17 = sand.u32 1, %s1033_s25  }
 0x202   : > { %s892_s28 = scalar_lea.sflag [#allocation10], %s891_s17 }
 0x203   : > { %1505 = dma.done.wait (!%p1226_p9), %s892_s28, 256  }
 0x204   : > { %1507 = vsyncadd (!%p1226_p9), %s892_s28, 4294967040  ;;  %s26_s23 = sadd.s32 1, %s1530_s23   ;;  %s1955_s18 = smov %s1514_s19 }
 0x205   : > { %p23_p2 = scmp.ge.s32.totalorder %s26_s23, 4   ;;  %s1956_s19 = smov %s1518_s20 }
 0x206   : > { %s1957_s20 = smov %s1716_s14  ;;  %s1958_s21 = smov %s1526_s22 }
 0x207   : > { %s1959_s22 = smov %s1961_s9  ;;  %25 = sbr.rel (!%p23_p2) target bundleno = 9 (0x9), region = 117 }
 0x20e   :  { %906 = vsyncpa [#allocation3], 1 }
 0x20f   :  { %908 = vsyncpa [#allocation3 + $0x1], 1 }
 0x210   :  { %909 = vsyncpa [#allocation6], 1 }
 0x211   :  { %910 = vsyncpa [#allocation4], 1 }
 0x212   :  { %912 = vsyncpa [#allocation4 + $0x1], 1 }
 0x213   :  { %913 = vsyncpa [#allocation10], 1 }
 0x214   :  { %915 = vsyncpa [#allocation10 + $0x1], 1 }

</bundles_post_ra>
